<compile_context>
chip_gen: v6e
topology: v6e:2x2x1
jax: 0.10.0
libtpu: 0.0.40
codegen_flags: <defaults>
</compile_context>

<pallas_src>
import jax
import jax.numpy as jnp
from jax import lax
from jax.experimental import pallas as pl
from jax.experimental.pallas import tpu as pltpu


def _round_up(a, m):
    return ((a + m - 1) // m) * m


def _linear_ltsf_kernel(x_ref, w_ref, b_ref, o_ref):
    # x_ref: (Cb, Bp, L)   w_ref: (Cb, L, Pp)   b_ref: (Cb, 1, Pp)
    # o_ref: (Cb, Bp, Pp)
    # Batched matmul over the channel-block axis; contraction over L.
    y = lax.dot_general(
        x_ref[...], w_ref[...],
        dimension_numbers=(((2,), (1,)), ((0,), (0,))),
        preferred_element_type=jnp.float32)
    o_ref[...] = (y + b_ref[...]).astype(o_ref.dtype)


def linear_ltsf(x, weights, biases):
    """x: [B, L, C]; weights: [C, P, L]; biases: [C, P] -> out: [B, P, C]."""
    B, L, C = x.shape
    Cw, P, Lw = weights.shape
    assert Cw == C and Lw == L

    # --- layout plumbing / padding (host side, zero-padded) ---------------
    B_pad = max(8, _round_up(B, 8))          # sublane dim of x / out blocks
    P_pad = _round_up(P, 128)                # lane dim of w / out blocks

    # Weights: [C, P, L] -> [C, L, P_pad]  (no transpose inside the kernel).
    w_clp = jnp.transpose(weights, (0, 2, 1))
    if P_pad != P:
        w_clp = jnp.pad(w_clp, ((0, 0), (0, 0), (0, P_pad - P)))
        b_pad = jnp.pad(biases, ((0, 0), (0, P_pad - P)))
    else:
        b_pad = biases

    # Activations channel-major: [B, L, C] -> [C, B_pad, L].
    x_cm = jnp.transpose(x, (2, 0, 1))
    if B_pad != B:
        x_cm = jnp.pad(x_cm, ((0, 0), (0, B_pad - B), (0, 0)))

    # --- channel-block size from a VMEM budget -----------------------------
    # Per-channel f32 bytes for one buffer set (x + w + bias + out); the
    # BlockSpec pipeline double-buffers, so keep 2 * Cb * bytes_per_c under a
    # budget that fits every generation (v7x has only 64 MiB physical VMEM).
    bytes_per_c = 4 * (B_pad * L + L * P_pad + P_pad + B_pad * P_pad)
    vmem_budget = 36 * 1024 * 1024
    Cb = max(1, min(C, vmem_budget // (2 * bytes_per_c)))
    # TODO(synk): for very large B where even Cb=1 exceeds the budget, add an
    # inner B-tile grid axis with the weight index_map independent of it.

    C_pad = pl.cdiv(C, Cb) * Cb
    if C_pad != C:
        x_cm = jnp.pad(x_cm, ((0, C_pad - C), (0, 0), (0, 0)))
        w_clp = jnp.pad(w_clp, ((0, C_pad - C), (0, 0), (0, 0)))
        b_pad = jnp.pad(b_pad, ((0, C_pad - C), (0, 0)))
    b_cm = b_pad.reshape(C_pad, 1, P_pad)

    num_blocks = C_pad // Cb

    out_cm = pl.pallas_call(
        _linear_ltsf_kernel,
        out_shape=jax.ShapeDtypeStruct((C_pad, B_pad, P_pad), x.dtype),
        grid_spec=pltpu.PrefetchScalarGridSpec(
            num_scalar_prefetch=0,
            grid=(num_blocks,),
            in_specs=[
                pl.BlockSpec((Cb, B_pad, L), lambda c: (c, 0, 0)),
                pl.BlockSpec((Cb, L, P_pad), lambda c: (c, 0, 0)),
                pl.BlockSpec((Cb, 1, P_pad), lambda c: (c, 0, 0)),
            ],
            out_specs=pl.BlockSpec((Cb, B_pad, P_pad), lambda c: (c, 0, 0)),
        ),
        compiler_params=pltpu.CompilerParams(
            dimension_semantics=("parallel",),
            vmem_limit_bytes=48 * 1024 * 1024),
    )(x_cm, w_clp, b_cm)

    # Drop padding and return to the PyTorch output layout [B, P, C].
    return jnp.transpose(out_cm[:C, :B, :P], (1, 2, 0))


if __name__ == "__main__":
    # Small, deterministic setup consistent with the module.
    batch = 2
    sequence_length = 8
    prediction_length = 16
    in_channels = 4

    key = jax.random.PRNGKey(0)
    kx, kw, kb = jax.random.split(key, 3)

    x = jax.random.normal(kx, (batch, sequence_length, in_channels),
                          dtype=jnp.float32)

    # nn.Linear default init: U(-1/sqrt(fan_in), 1/sqrt(fan_in))
    bound = 1.0 / jnp.sqrt(jnp.float32(sequence_length))
    weights = jax.random.uniform(
        kw, (in_channels, prediction_length, sequence_length),
        minval=-bound, maxval=bound, dtype=jnp.float32)
    biases = jax.random.uniform(
        kb, (in_channels, prediction_length),
        minval=-bound, maxval=bound, dtype=jnp.float32)

    out = linear_ltsf(x, weights, biases)
    out = jax.block_until_ready(out)

    # Pure-JAX reference check (out[:, :, c] = x[:, :, c] @ W_c^T + b_c).
    ref = jnp.einsum('blc,cpl->bpc', x, weights) + jnp.transpose(biases)[None]
    assert out.shape == (batch, prediction_length, in_channels)
    assert jnp.allclose(out, ref, atol=1e-5, rtol=1e-5)

    print("KERNEL_OK")
</pallas_src>

<mosaic_0001>
module attributes {stable_mosaic.version = 11 : i64} {
  func.func @_linear_ltsf_kernel(%arg0: i32, %arg1: memref<4x8x8xf32, #tpu.memory_space<vmem>>, %arg2: memref<4x8x128xf32, #tpu.memory_space<vmem>>, %arg3: memref<4x1x128xf32, #tpu.memory_space<vmem>>, %arg4: memref<4x8x128xf32, #tpu.memory_space<vmem>>) attributes {dimension_semantics = [#tpu.dimension_semantics<parallel>], iteration_bounds = array<i64: 1>, scalar_prefetch = 0 : i64, scratch_operands = 0 : i64, tpu.core_type = #tpu.core_type<tc>, window_params = [{transform_indices = @transform_0, window_bounds = array<i64: 4, 8, 8>}, {transform_indices = @transform_1, window_bounds = array<i64: 4, 8, 128>}, {transform_indices = @transform_2, window_bounds = array<i64: 4, 1, 128>}, {transform_indices = @transform_3, window_bounds = array<i64: 4, 8, 128>}]} {
    %c0 = arith.constant 0 : index
    %c0_0 = arith.constant 0 : index
    %c0_1 = arith.constant 0 : index
    %0 = vector.load %arg1[%c0, %c0_0, %c0_1] : memref<4x8x8xf32, #tpu.memory_space<vmem>>, vector<4x8x8xf32>
    %c0_2 = arith.constant 0 : index
    %c0_3 = arith.constant 0 : index
    %c0_4 = arith.constant 0 : index
    %1 = vector.load %arg2[%c0_2, %c0_3, %c0_4] : memref<4x8x128xf32, #tpu.memory_space<vmem>>, vector<4x8x128xf32>
    %cst = arith.constant dense<0.000000e+00> : vector<4x8x128xf32>
    %2 = tpu.matmul %0, %1, %cst {dimension_numbers = #tpu.dot_dimension_numbers<[2], [1], [1], [2], [0, 0, 0, 1, 1, 2], [0], [0]>} : vector<4x8x8xf32>, vector<4x8x128xf32>, vector<4x8x128xf32> -> vector<4x8x128xf32>
    %c0_5 = arith.constant 0 : index
    %c0_6 = arith.constant 0 : index
    %c0_7 = arith.constant 0 : index
    %3 = vector.load %arg3[%c0_5, %c0_6, %c0_7] : memref<4x1x128xf32, #tpu.memory_space<vmem>>, vector<4x1x128xf32>
    %4 = vector.broadcast %3 : vector<4x1x128xf32> to vector<4x8x128xf32>
    %5 = arith.addf %2, %4 : vector<4x8x128xf32>
    %c0_8 = arith.constant 0 : index
    %c0_9 = arith.constant 0 : index
    %c0_10 = arith.constant 0 : index
    %6 = vector.load %arg4[%c0_8, %c0_9, %c0_10] : memref<4x8x128xf32, #tpu.memory_space<vmem>>, vector<4x8x128xf32>
    tpu.vector_store %arg4[%c0_8, %c0_9, %c0_10], %5 {strides = array<i32>} : memref<4x8x128xf32, #tpu.memory_space<vmem>>, vector<4x8x128xf32>,
    return
  }
  func.func @transform_0(%arg0: i32) -> (i32, i32, i32) {
    %c0_i32 = arith.constant 0 : i32
    %c0_i32_0 = arith.constant 0 : i32
    %c0_i32_1 = arith.constant 0 : i32
    return %arg0, %c0_i32, %c0_i32_0 : i32, i32, i32
  }
  func.func @transform_1(%arg0: i32) -> (i32, i32, i32) {
    %c0_i32 = arith.constant 0 : i32
    %c0_i32_0 = arith.constant 0 : i32
    %c0_i32_1 = arith.constant 0 : i32
    return %arg0, %c0_i32, %c0_i32_0 : i32, i32, i32
  }
  func.func @transform_2(%arg0: i32) -> (i32, i32, i32) {
    %c0_i32 = arith.constant 0 : i32
    %c0_i32_0 = arith.constant 0 : i32
    %c0_i32_1 = arith.constant 0 : i32
    return %arg0, %c0_i32, %c0_i32_0 : i32, i32, i32
  }
  func.func @transform_3(%arg0: i32) -> (i32, i32, i32) {
    %c0_i32 = arith.constant 0 : i32
    %c0_i32_0 = arith.constant 0 : i32
    %c0_i32_1 = arith.constant 0 : i32
    return %arg0, %c0_i32, %c0_i32_0 : i32, i32, i32
  }
}

</mosaic_0001>

<bundles_post_ra>
// kernel: tpu_custom_call.1
= control target key start
LH: loop header
LB: loop body
LE: loop exit
PB: predicated region body
PF: predicated region fallthrough
CT: control target
= control target key end

     0   :  { %8 = vsyncpa [#allocation3], 0  ;;  %s598_s0 = inlined_call_operand.hbm [shape: f32[4,8,8], index: 0, kind: input, shape index: {}]   ;;  %s599_s1 = inlined_call_operand.hbm [shape: f32[4,8,128], index: 1, kind: input, shape index: {}]   ;;  %s600_s2 = inlined_call_operand.hbm [shape: f32[4,1,128], index: 2, kind: input, shape index: {}]   ;;  %s601_s3 = inlined_call_operand.hbm [shape: f32[4,8,128], index: 3, kind: output, shape index: {}]  }
   0x1   :  { %9 = vsyncpa [#allocation6], 0 }
   0x2   :  { %10 = vsyncpa [#allocation4], 0  ;;  %s539_s12 = smov [#allocation5]   ;;  %s540_s14 = smov [#allocation2]  }
   0x3   :  { %s28_s13 = sshll.u32 %s539_s12, 4  ;;  %s16_s15 = sshll.u32 %s540_s14, 4  ;;  %s29_s13 = int_to_ptr.vmem [resolvable:$true] %s28_s13  ;;  %s17_s15 = int_to_ptr.vmem [resolvable:$true] %s16_s15 }
   0x4   :  { %s461_s16 = scalar_lea.vmem %s29_s13, 512  ;;  %p466_p1 = scmp.lt.s32.totalorder %s29_s13, %s29_s13 }
   0x5   :  { %p462_p0 = scmp.ne.s32.totalorder %s29_s13, %s461_s16  ;;  %p467_p2 = scmp.lt.s32.totalorder %s461_s16, %s461_s16 }
   0x7   :  { %p468_p3 = por %p467_p2, %p466_p1 }
   0x9   :  { %p469_p4 = pnand %p468_p3, %p462_p0 }
   0xb   :  { %472 = shalt.err (!%p469_p4)
}
   0xc   :  { %s541_s17 = smov 128   ;;  %s542_s18 = smov 8  }
   0xd   :  { %34 = dma.hbm_to_vmem [thread:$0]  %s599_s1, 512, %s29_s13, [#allocation6], %s541_s17, %s541_s17, %s542_s18  }
   0xe   :  { %s481_s21 = scalar_lea.vmem %s17_s15, 512  ;;  %p486_p6 = scmp.lt.s32.totalorder %s17_s15, %s17_s15 }
   0xf   :  { %p482_p5 = scmp.ne.s32.totalorder %s17_s15, %s481_s21  ;;  %p487_p7 = scmp.lt.s32.totalorder %s481_s21, %s481_s21 }
  0x11   :  { %p488_p8 = por %p487_p7, %p486_p6 }
  0x13   :  { %p489_p9 = pnand %p488_p8, %p482_p5 }
  0x15   :  { %492 = shalt.err (!%p489_p9)
}
  0x16   :  { %22 = dma.hbm_to_vmem [thread:$0]  %s598_s0, 512, %s17_s15, [#allocation3], %s541_s17, %s541_s17, %s542_s18  }
  0x17   :  { %s543_s24 = smov [#allocation7]  }
  0x18   :  { %s40_s25 = sshll.u32 %s543_s24, 4  ;;  %s41_s25 = int_to_ptr.vmem [resolvable:$true] %s40_s25 }
  0x19   :  { %s501_s26 = scalar_lea.vmem %s41_s25, 64  ;;  %p506_p11 = scmp.lt.s32.totalorder %s41_s25, %s41_s25 }
  0x1a   :  { %p502_p10 = scmp.ne.s32.totalorder %s41_s25, %s501_s26  ;;  %p507_p12 = scmp.lt.s32.totalorder %s501_s26, %s501_s26 }
  0x1c   :  { %p508_p13 = por %p507_p12, %p506_p11 }
  0x1e   :  { %p509_p0 = pnand %p508_p13, %p502_p10 }
  0x20   :  { %512 = shalt.err (!%p509_p0)
}
  0x21   :  { %s544_s1 = smov 16   ;;  %s545_s27 = smov 1  }
  0x22   :  { %46 = dma.hbm_to_vmem [thread:$0]  %s600_s2, 64, %s41_s25, [#allocation6], %s544_s1, %s544_s1, %s545_s27  }
  0x23   :  { %533 = dma.done.wait [#allocation3], 512  }
  0x24   :  { %534 = vsyncadd [#allocation3], 4294966784 }
  0x25   :  { %535 = dma.done.wait [#allocation6], 576  }
  0x26   :  { %536 = vsyncadd [#allocation6], 4294966720  ;;  %v546_v0 = vmov 0.0   ;;  %vm547_vm0 = vmmov 0   ;;  %vm92_vm1 = vcmask 64512   ;;  %v60_v1 = vld [vmem:[#allocation5] sm:$0xff] }
  0x27   :  { %423 = vmatprep.subr.mxu0 %v546_v0  ;;  %428 = vmatprep.subr.mxu1 %v546_v0  ;;  %v61_v2 = vld [vmem:[#allocation5 + $0x8] sm:$0xff]  ;;  %v56_v3 = vld [vmem:[#allocation2] sm:$0xff]  ;;  %v62_v5 = vld [vmem:[#allocation5 + $0x10] sm:$0xff]  ;;  %s548_s0 = smov [#allocation8]  }
  0x28   :  { %425 = vmatprep.mubr.msk.f32.mxu0 %vm547_vm0, %v546_v0  ;;  %430 = vmatprep.mubr.msk.f32.mxu1 %vm547_vm0, %v546_v0  ;;  %v57_v4 = vld [vmem:[#allocation2 + $0x8] sm:$0xff]  ;;  %v63_v6 = vld [vmem:[#allocation5 + $0x18] sm:$0xff]  ;;  %v58_v7 = vld [vmem:[#allocation2 + $0x10] sm:$0xff]  ;;  %s394_s2 = sshll.u32 %s548_s0, 4  ;;  %s395_s2 = int_to_ptr.vmem [resolvable:$true] %s394_s2 }
  0x29   :  { %424 = vmatpush3.msra.mxu0 %v60_v1  ;;  %429 = vmatpush3.msra.mxu1 %v61_v2  ;;  %v59_v8 = vld [vmem:[#allocation2 + $0x18] sm:$0xff]  ;;  %v407_v9 = vld [vmem:[#allocation7] ss:$0 sm:$0xff]  ;;  %v408_v10 = vld [vmem:[#allocation7 + $0x1] ss:$0 sm:$0xff]  ;;  %s513_s30 = scalar_lea.vmem %s395_s2, 512  ;;  %p518_p2 = scmp.lt.s32.totalorder %s395_s2, %s395_s2 }
  0x2a   :  { %426 = vmatmul.mubr.msk.f32.vlgmr.msra.gmra.mxu0 %vm92_vm1, %v56_v3  ;;  %431 = vmatmul.mubr.msk.f32.vlgmr.msra.gmra.mxu1 %vm92_vm1, %v57_v4  ;;  %v409_v17 = vld [vmem:[#allocation7 + $0x2] ss:$0 sm:$0xff]  ;;  %v410_v18 = vld [vmem:[#allocation7 + $0x3] ss:$0 sm:$0xff]  ;;  %p514_p1 = scmp.ne.s32.totalorder %s395_s2, %s513_s30  ;;  %p519_p3 = scmp.lt.s32.totalorder %s513_s30, %s513_s30 }
  0x2b   :  { %433 = vmatprep.subr.mxu0 %v546_v0  ;;  %438 = vmatprep.subr.mxu1 %v546_v0 }
  0x2c   :  { %434 = vmatpush3.msra.mxu0 %v62_v5  ;;  %439 = vmatpush3.msra.mxu1 %v63_v6  ;;  %p520_p4 = por %p519_p3, %p518_p2 }
  0x2d   :  { %435 = vmatprep.mubr.msk.f32.mxu0 %vm547_vm0, %v546_v0  ;;  %440 = vmatprep.mubr.msk.f32.mxu1 %vm547_vm0, %v546_v0 }
  0x2e   :  { %436 = vmatmul.mubr.msk.f32.vlgmr.msra.gmra.mxu0 %vm92_vm1, %v58_v7  ;;  %441 = vmatmul.mubr.msk.f32.vlgmr.msra.gmra.mxu1 %vm92_vm1, %v59_v8  ;;  %p521_p5 = pnand %p520_p4, %p514_p1 }
  0xea   :  { %v162_v11 = vpop.f32.mrf.mxu0  ;;  %v235_v12 = vpop.f32.mrf.mxu1 }
  0xeb   :  { %v163_v13 = vadd.f32 %v407_v9, %v162_v11  ;;  %v236_v14 = vadd.f32 %v408_v10, %v235_v12 }
  0xec   :  { %v427_v15 = vpop.f32.mrf.mxu0  ;;  %v432_v16 = vpop.f32.mrf.mxu1 }
  0xed   :  { %385 = vst [vmem:[#allocation8] sm:$0xff] %v163_v13  ;;  %386 = vst [vmem:[#allocation8 + $0x8] sm:$0xff] %v236_v14 }
  0xee   :  { %v308_v19 = vpop.f32.mrf.mxu0  ;;  %v381_v20 = vpop.f32.mrf.mxu1 }
  0xef   :  { %v309_v21 = vadd.f32 %v409_v17, %v308_v19  ;;  %v382_v22 = vadd.f32 %v410_v18, %v381_v20 }
  0xf0   :  { %v437_v23 = vpop.f32.mrf.mxu0  ;;  %v442_v24 = vpop.f32.mrf.mxu1 }
  0xf1   :  { %387 = vst [vmem:[#allocation8 + $0x10] sm:$0xff] %v309_v21  ;;  %388 = vst [vmem:[#allocation8 + $0x18] sm:$0xff] %v382_v22 }
  0xf2   :  { %524 = shalt.err (!%p521_p5)
}
  0xf3   :  { %400 = dma.vmem_to_hbm [thread:$0]  %s395_s2, 512, %s601_s3, [#allocation4], %s541_s17, %s541_s17, %s542_s18  }
  0xf4   :  { %537 = dma.done.wait [#allocation4], 512  }
  0xf5   :  { %538 = vsyncadd [#allocation4], 4294966784 }
  0xf6   :  { %404 = vsyncpa [#allocation3], 1 }
  0xf7   :  { %405 = vsyncpa [#allocation6], 1 }
  0xf8   :  { %406 = vsyncpa [#allocation4], 1 }

</bundles_post_ra>
